<compile_context>
chip_gen: v6e
topology: v6e:2x2x1
jax: 0.10.0
libtpu: 0.0.40
codegen_flags: <defaults>
</compile_context>

<pallas_src>
import math

import jax
import jax.numpy as jnp
from jax import lax
from jax.experimental import pallas as pl
from jax.experimental.pallas import tpu as pltpu


def _round_up(x: int, m: int) -> int:
    return (x + m - 1) // m * m


# NT contraction: A (M, K) . B (N, K) -> (M, N), contracting the shared last
# axis.  Used for the two matmuls that touch the raw (tile_b, d_in) input tile.
_NT_DIMS = (((1,), (1,)), ((), ()))


def make_decoder_kernel(n_linear: int, latent_in: int, last_rows: int):
    """Kernel closed over static layer count, skip index and final-row count."""
    has_skip = 0 < latent_in < n_linear

    def kernel(x_ref, w_in_ref, w_hid_ref, b_ref, out_ref):
        # x_ref:     (tile_b, d_in) f32   raw input tile (batch on sublanes)
        # w_in_ref:  (2, P, d_in)  bf16   [layer-0 W, raw-input half of skip W]
        # w_hid_ref: (n_linear-1, P, P) bf16   layers 1..n-1 (hidden-facing)
        # b_ref:     (n_linear, P, 1) f32 biases
        # out_ref:   (1, tile_b)          SDF prediction (lane-dense)
        #
        # Activations are (P, tile_b): hidden width on sublanes, batch on the
        # 128-wide lane axis, so every layer is a single MXU dot.

        # ---- layer 0: h = relu(W0 . x^T + b0) -------------------------------
        xb = x_ref[...].astype(jnp.bfloat16)            # loaded at use site
        h = lax.dot_general(w_in_ref[0], xb, _NT_DIMS,
                            preferred_element_type=jnp.float32)
        h = jnp.maximum(h + b_ref[0], 0.0)              # ReLU; dropout(eval)=id

        # ---- layers 1 .. n_linear-1 -----------------------------------------
        for i in range(1, n_linear):
            is_last = i == n_linear - 1
            trim = is_last and not (has_skip and i == latent_in)
            if trim:
                # Final layer has out_dim == 1; only keep a few padded rows so
                # the MXU does not compute 48+ rows of zeros.
                w = w_hid_ref[i - 1, 0:last_rows, :]
                b = b_ref[i, 0:last_rows]
            else:
                w = w_hid_ref[i - 1]
                b = b_ref[i]
            acc = jnp.dot(w, h.astype(jnp.bfloat16),
                          preferred_element_type=jnp.float32)
            if has_skip and i == latent_in:
                # Algebraic skip (no concat / relayout):
                #   W @ relu(cat(h, x)) == W_hid @ relu(h) + W_in @ relu(x)
                # The module applies ReLU AFTER torch.cat, so the raw-input
                # half is ReLU'd here too.  x is re-read from VMEM instead of
                # being kept live since layer 0.
                rx = jnp.maximum(x_ref[...], 0.0).astype(jnp.bfloat16)
                acc = acc + lax.dot_general(w_in_ref[1], rx, _NT_DIMS,
                                            preferred_element_type=jnp.float32)
            h = acc + b                                  # bias add in f32
            if not is_last:
                h = jnp.maximum(h, 0.0)                  # ReLU; dropout(eval)=id

        out_ref[...] = h[0:1, :].astype(out_ref.dtype)

    return kernel


def init_decoder_params(key, latent_dim, hidden_dims, latent_in=4):
    """Deterministic synthetic params, PyTorch-native (out_dim, in_dim) layout,
    with nn.utils.weight_norm (dim=0) semantics applied: w = g * v / ||v||."""
    dims = [latent_dim + 3] + list(hidden_dims) + [1]
    n_linear = len(dims) - 1
    params = []
    for i in range(n_linear):
        in_dim = dims[i]
        out_dim = dims[i + 1] - dims[0] if (i + 1) == latent_in else dims[i + 1]
        key, kv, kg, kb = jax.random.split(key, 4)
        bound = 1.0 / math.sqrt(in_dim)
        v = jax.random.uniform(kv, (out_dim, in_dim), jnp.float32, -bound, bound)
        g = jax.random.uniform(kg, (out_dim, 1), jnp.float32, 0.5, 1.5)
        b = jax.random.uniform(kb, (out_dim,), jnp.float32, -bound, bound)
        w = g * v / jnp.linalg.norm(v, axis=1, keepdims=True)
        params.append((w, b))               # w: (out_dim, in_dim), b: (out_dim,)
    return params


def pack_decoder_params(params, d_in: int, latent_in: int):
    """Pack per-layer weights into two bf16 VMEM-resident blobs plus f32 biases.

    * w_in  (2, P, d_in): layer-0 weight and the 'raw input' half of the
      post-skip layer's weight (both consume the (tile_b, d_in) input tile).
    * w_hid (n_linear-1, P, P): layers 1..n-1, zero-padded; for the skip layer
      only the columns acting on the hidden activation are stored.
    * bias  (n_linear, P, 1) f32.
    """
    n_linear = len(params)
    has_skip = 0 < latent_in < n_linear
    out_dims = [w.shape[0] for w, _ in params]
    hid_in_dims = [w.shape[1] for w, _ in params[1:]]
    P = _round_up(max(out_dims + hid_in_dims + [8]), 8)

    w_in = jnp.zeros((2, P, d_in), jnp.float32)
    w_hid = jnp.zeros((max(n_linear - 1, 1), P, P), jnp.float32)
    bias = jnp.zeros((n_linear, P, 1), jnp.float32)
    for i, (w, b) in enumerate(params):
        out_dim, in_dim = w.shape
        bias = bias.at[i, :out_dim, 0].set(b)
        if i == 0:
            w_in = w_in.at[0, :out_dim, :in_dim].set(w)
        elif has_skip and i == latent_in:
            h_cols = in_dim - d_in               # columns acting on hidden part
            w_hid = w_hid.at[i - 1, :out_dim, :h_cols].set(w[:, :h_cols])
            w_in = w_in.at[1, :out_dim, :d_in].set(w[:, h_cols:])
        else:
            w_hid = w_hid.at[i - 1, :out_dim, :in_dim].set(w)

    # Final-layer rows kept (>=16 so the bf16 sublane packing stays native).
    last_rows = min(P, _round_up(params[-1][0].shape[0], 16))
    return (w_in.astype(jnp.bfloat16), w_hid.astype(jnp.bfloat16), bias,
            P, last_rows)


def decoder_forward(x, params, latent_in=4, tile_b=256):
    """x: (B, latent_dim + 3) -> (B, 1) SDF predictions (eval mode)."""
    assert x.ndim == 2
    B, d_in = x.shape
    n_linear = len(params)
    assert n_linear >= 2, "need at least one hidden layer"
    w_in, w_hid, bias, P, last_rows = pack_decoder_params(params, d_in, latent_in)

    # Lane-aligned batch tiling (tile_b % 128 == 0 enforced), aiming for >= 8
    # grid steps so double-buffering hides the per-step input DMA and v7x gets
    # >= 4 steps per TensorCore.  Resident weights+biases are only ~300 KiB, so
    # VMEM is never the constraint here.
    # TODO(synk): for tile_b >= 2048, add an inner unrolled fori_loop over
    # 256-lane chunks so the activation chain stays inside the vreg file.
    tb = max(128, _round_up(tile_b, 128))
    tb = min(tb, max(128, (_round_up(B, 128) // 8) // 128 * 128))
    B_pad = _round_up(B, tb)
    x_in = x if B_pad == B else jnp.zeros((B_pad, d_in), x.dtype).at[:B].set(x)

    kernel = make_decoder_kernel(n_linear, latent_in, last_rows)

    out = pl.pallas_call(
        kernel,
        out_shape=jax.ShapeDtypeStruct((1, B_pad), x.dtype),
        grid=(B_pad // tb,),
        in_specs=[
            pl.BlockSpec((tb, d_in), lambda i: (i, 0)),      # input tile
            pl.BlockSpec(w_in.shape, lambda i: (0, 0, 0)),   # resident bf16
            pl.BlockSpec(w_hid.shape, lambda i: (0, 0, 0)),  # resident bf16
            pl.BlockSpec(bias.shape, lambda i: (0, 0, 0)),   # resident f32
        ],
        out_specs=pl.BlockSpec((1, tb), lambda i: (0, i)),   # lane-dense out
        compiler_params=pltpu.CompilerParams(
            dimension_semantics=("parallel",)),
    )(x_in, w_in, w_hid, bias)

    return out[:, :B].T                                       # (B, 1)


def decoder_ref(x, params, latent_in=4, bf16_matmul=False):
    """Plain-JAX reference mirroring the PyTorch forward (eval mode).
    bf16_matmul=True applies the same precision policy as the kernel
    (bf16 matmul operands, f32 accumulation)."""
    def mm(a, w):
        if bf16_matmul:
            return jnp.dot(a.astype(jnp.bfloat16), w.astype(jnp.bfloat16).T,
                           preferred_element_type=jnp.float32)
        return a @ w.T
    out = x
    n = len(params)
    for i, (w, b) in enumerate(params):
        out = mm(out, w) + b
        if i + 1 == latent_in:
            out = jnp.concatenate([out, x], axis=1)
        if i < n - 1:
            out = jnp.maximum(out, 0.0)
    return out


if __name__ == "__main__":
    # Module-consistent shapes:
    #   latent_dim = 29 -> input dim 32, hidden_dims = [64]*6, latent_in = 4
    #   (layer 3 outputs 64-32=32, concat with input -> 64), final layer -> 1.
    # B = 1024 with the default tiling -> 8 grid steps of 128 lanes.
    latent_dim = 29
    hidden_dims = [64, 64, 64, 64, 64, 64]
    latent_in = 4
    B = 1024

    key = jax.random.PRNGKey(0)
    key, kx = jax.random.split(key)
    x = jax.random.normal(kx, (B, latent_dim + 3), jnp.float32)
    params = init_decoder_params(key, latent_dim, hidden_dims, latent_in)

    out = decoder_forward(x, params, latent_in=latent_in)
    out = jax.block_until_ready(out)
    assert out.shape == (B, 1), out.shape

    # Same-precision-policy reference (bf16 matmul operands, f32 accumulation):
    ref_bf16 = decoder_ref(x, params, latent_in=latent_in, bf16_matmul=True)
    err_b = float(jnp.max(jnp.abs(out - ref_bf16)))
    assert err_b < 5e-3, "mismatch vs bf16-policy reference: max err %g" % err_b

    # Full-f32 reference: loose bound documenting the bf16 precision envelope.
    ref_f32 = decoder_ref(x, params, latent_in=latent_in, bf16_matmul=False)
    err_f = float(jnp.max(jnp.abs(out - ref_f32)))
    assert err_f < 1e-1, "mismatch vs f32 reference: max err %g" % err_f

    print("KERNEL_OK")
</pallas_src>

<mosaic_0001>
module attributes {stable_mosaic.version = 11 : i64} {
  func.func @kernel(%arg0: i32, %arg1: memref<128x32xf32, #tpu.memory_space<vmem>>, %arg2: memref<2x64x32xbf16, #tpu.memory_space<vmem>>, %arg3: memref<6x64x64xbf16, #tpu.memory_space<vmem>>, %arg4: memref<7x64x1xf32, #tpu.memory_space<vmem>>, %arg5: memref<1x128xf32, #tpu.memory_space<vmem>>) attributes {dimension_semantics = [#tpu.dimension_semantics<parallel>], iteration_bounds = array<i64: 8>, scalar_prefetch = 0 : i64, scratch_operands = 0 : i64, tpu.core_type = #tpu.core_type<tc>, window_params = [{transform_indices = @transform_0, window_bounds = array<i64: 128, 32>}, {pipeline_mode = #tpu.pipeline_mode<synchronous>, transform_indices = @transform_1, window_bounds = array<i64: 2, 64, 32>}, {pipeline_mode = #tpu.pipeline_mode<synchronous>, transform_indices = @transform_2, window_bounds = array<i64: 6, 64, 64>}, {pipeline_mode = #tpu.pipeline_mode<synchronous>, transform_indices = @transform_3, window_bounds = array<i64: 7, 64, 1>}, {transform_indices = @transform_4, window_bounds = array<i64: 1, 128>}]} {
    %c0 = arith.constant 0 : index
    %c0_0 = arith.constant 0 : index
    %0 = vector.load %arg1[%c0, %c0_0] : memref<128x32xf32, #tpu.memory_space<vmem>>, vector<128x32xf32>
    %1 = arith.truncf %0 : vector<128x32xf32> to vector<128x32xbf16>
    %c0_1 = arith.constant 0 : index
    %c0_2 = arith.constant 0 : index
    %c0_3 = arith.constant 0 : index
    %2 = vector.load %arg2[%c0_1, %c0_2, %c0_3] : memref<2x64x32xbf16, #tpu.memory_space<vmem>>, vector<1x64x32xbf16>
    %3 = vector.shape_cast %2 : vector<1x64x32xbf16> to vector<64x32xbf16>
    %cst = arith.constant dense<0.000000e+00> : vector<64x128xf32>
    %4 = tpu.matmul %3, %1, %cst {dimension_numbers = #tpu.dot_dimension_numbers<[1], [1], [0], [0], [0, 0, 1, 0], [], []>} : vector<64x32xbf16>, vector<128x32xbf16>, vector<64x128xf32> -> vector<64x128xf32>
    %c0_4 = arith.constant 0 : index
    %c0_5 = arith.constant 0 : index
    %c0_6 = arith.constant 0 : index
    %5 = vector.load %arg4[%c0_4, %c0_5, %c0_6] : memref<7x64x1xf32, #tpu.memory_space<vmem>>, vector<1x64x1xf32>
    %6 = vector.shape_cast %5 : vector<1x64x1xf32> to vector<64x1xf32>
    %7 = vector.broadcast %6 : vector<64x1xf32> to vector<64x128xf32>
    %8 = arith.addf %4, %7 : vector<64x128xf32>
    %cst_7 = arith.constant 0.000000e+00 : f32
    %9 = vector.broadcast %cst_7 : f32 to vector<64x128xf32>
    %10 = arith.maximumf %8, %9 : vector<64x128xf32>
    %c0_8 = arith.constant 0 : index
    %c0_9 = arith.constant 0 : index
    %c0_10 = arith.constant 0 : index
    %11 = vector.load %arg3[%c0_8, %c0_9, %c0_10] : memref<6x64x64xbf16, #tpu.memory_space<vmem>>, vector<1x64x64xbf16>
    %12 = vector.shape_cast %11 : vector<1x64x64xbf16> to vector<64x64xbf16>
    %c1 = arith.constant 1 : index
    %c0_11 = arith.constant 0 : index
    %c0_12 = arith.constant 0 : index
    %13 = vector.load %arg4[%c1, %c0_11, %c0_12] : memref<7x64x1xf32, #tpu.memory_space<vmem>>, vector<1x64x1xf32>
    %14 = vector.shape_cast %13 : vector<1x64x1xf32> to vector<64x1xf32>
    %15 = arith.truncf %10 : vector<64x128xf32> to vector<64x128xbf16>
    %cst_13 = arith.constant dense<0.000000e+00> : vector<64x128xf32>
    %16 = tpu.matmul %12, %15, %cst_13 {dimension_numbers = #tpu.dot_dimension_numbers<[1], [0], [0], [1], [0, 0, 1, 1], [], []>} : vector<64x64xbf16>, vector<64x128xbf16>, vector<64x128xf32> -> vector<64x128xf32>
    %17 = vector.broadcast %14 : vector<64x1xf32> to vector<64x128xf32>
    %18 = arith.addf %16, %17 : vector<64x128xf32>
    %cst_14 = arith.constant 0.000000e+00 : f32
    %19 = vector.broadcast %cst_14 : f32 to vector<64x128xf32>
    %20 = arith.maximumf %18, %19 : vector<64x128xf32>
    %c1_15 = arith.constant 1 : index
    %c0_16 = arith.constant 0 : index
    %c0_17 = arith.constant 0 : index
    %21 = vector.load %arg3[%c1_15, %c0_16, %c0_17] : memref<6x64x64xbf16, #tpu.memory_space<vmem>>, vector<1x64x64xbf16>
    %22 = vector.shape_cast %21 : vector<1x64x64xbf16> to vector<64x64xbf16>
    %c2 = arith.constant 2 : index
    %c0_18 = arith.constant 0 : index
    %c0_19 = arith.constant 0 : index
    %23 = vector.load %arg4[%c2, %c0_18, %c0_19] : memref<7x64x1xf32, #tpu.memory_space<vmem>>, vector<1x64x1xf32>
    %24 = vector.shape_cast %23 : vector<1x64x1xf32> to vector<64x1xf32>
    %25 = arith.truncf %20 : vector<64x128xf32> to vector<64x128xbf16>
    %cst_20 = arith.constant dense<0.000000e+00> : vector<64x128xf32>
    %26 = tpu.matmul %22, %25, %cst_20 {dimension_numbers = #tpu.dot_dimension_numbers<[1], [0], [0], [1], [0, 0, 1, 1], [], []>} : vector<64x64xbf16>, vector<64x128xbf16>, vector<64x128xf32> -> vector<64x128xf32>
    %27 = vector.broadcast %24 : vector<64x1xf32> to vector<64x128xf32>
    %28 = arith.addf %26, %27 : vector<64x128xf32>
    %cst_21 = arith.constant 0.000000e+00 : f32
    %29 = vector.broadcast %cst_21 : f32 to vector<64x128xf32>
    %30 = arith.maximumf %28, %29 : vector<64x128xf32>
    %c2_22 = arith.constant 2 : index
    %c0_23 = arith.constant 0 : index
    %c0_24 = arith.constant 0 : index
    %31 = vector.load %arg3[%c2_22, %c0_23, %c0_24] : memref<6x64x64xbf16, #tpu.memory_space<vmem>>, vector<1x64x64xbf16>
    %32 = vector.shape_cast %31 : vector<1x64x64xbf16> to vector<64x64xbf16>
    %c3 = arith.constant 3 : index
    %c0_25 = arith.constant 0 : index
    %c0_26 = arith.constant 0 : index
    %33 = vector.load %arg4[%c3, %c0_25, %c0_26] : memref<7x64x1xf32, #tpu.memory_space<vmem>>, vector<1x64x1xf32>
    %34 = vector.shape_cast %33 : vector<1x64x1xf32> to vector<64x1xf32>
    %35 = arith.truncf %30 : vector<64x128xf32> to vector<64x128xbf16>
    %cst_27 = arith.constant dense<0.000000e+00> : vector<64x128xf32>
    %36 = tpu.matmul %32, %35, %cst_27 {dimension_numbers = #tpu.dot_dimension_numbers<[1], [0], [0], [1], [0, 0, 1, 1], [], []>} : vector<64x64xbf16>, vector<64x128xbf16>, vector<64x128xf32> -> vector<64x128xf32>
    %37 = vector.broadcast %34 : vector<64x1xf32> to vector<64x128xf32>
    %38 = arith.addf %36, %37 : vector<64x128xf32>
    %cst_28 = arith.constant 0.000000e+00 : f32
    %39 = vector.broadcast %cst_28 : f32 to vector<64x128xf32>
    %40 = arith.maximumf %38, %39 : vector<64x128xf32>
    %c3_29 = arith.constant 3 : index
    %c0_30 = arith.constant 0 : index
    %c0_31 = arith.constant 0 : index
    %41 = vector.load %arg3[%c3_29, %c0_30, %c0_31] : memref<6x64x64xbf16, #tpu.memory_space<vmem>>, vector<1x64x64xbf16>
    %42 = vector.shape_cast %41 : vector<1x64x64xbf16> to vector<64x64xbf16>
    %c4 = arith.constant 4 : index
    %c0_32 = arith.constant 0 : index
    %c0_33 = arith.constant 0 : index
    %43 = vector.load %arg4[%c4, %c0_32, %c0_33] : memref<7x64x1xf32, #tpu.memory_space<vmem>>, vector<1x64x1xf32>
    %44 = vector.shape_cast %43 : vector<1x64x1xf32> to vector<64x1xf32>
    %45 = arith.truncf %40 : vector<64x128xf32> to vector<64x128xbf16>
    %cst_34 = arith.constant dense<0.000000e+00> : vector<64x128xf32>
    %46 = tpu.matmul %42, %45, %cst_34 {dimension_numbers = #tpu.dot_dimension_numbers<[1], [0], [0], [1], [0, 0, 1, 1], [], []>} : vector<64x64xbf16>, vector<64x128xbf16>, vector<64x128xf32> -> vector<64x128xf32>
    %c0_35 = arith.constant 0 : index
    %c0_36 = arith.constant 0 : index
    %47 = vector.load %arg1[%c0_35, %c0_36] : memref<128x32xf32, #tpu.memory_space<vmem>>, vector<128x32xf32>
    %cst_37 = arith.constant 0.000000e+00 : f32
    %48 = vector.broadcast %cst_37 : f32 to vector<128x32xf32>
    %49 = arith.maximumf %47, %48 : vector<128x32xf32>
    %50 = arith.truncf %49 : vector<128x32xf32> to vector<128x32xbf16>
    %c1_38 = arith.constant 1 : index
    %c0_39 = arith.constant 0 : index
    %c0_40 = arith.constant 0 : index
    %51 = vector.load %arg2[%c1_38, %c0_39, %c0_40] : memref<2x64x32xbf16, #tpu.memory_space<vmem>>, vector<1x64x32xbf16>
    %52 = vector.shape_cast %51 : vector<1x64x32xbf16> to vector<64x32xbf16>
    %cst_41 = arith.constant dense<0.000000e+00> : vector<64x128xf32>
    %53 = tpu.matmul %52, %50, %cst_41 {dimension_numbers = #tpu.dot_dimension_numbers<[1], [1], [0], [0], [0, 0, 1, 0], [], []>} : vector<64x32xbf16>, vector<128x32xbf16>, vector<64x128xf32> -> vector<64x128xf32>
    %54 = arith.addf %46, %53 : vector<64x128xf32>
    %55 = vector.broadcast %44 : vector<64x1xf32> to vector<64x128xf32>
    %56 = arith.addf %54, %55 : vector<64x128xf32>
    %cst_42 = arith.constant 0.000000e+00 : f32
    %57 = vector.broadcast %cst_42 : f32 to vector<64x128xf32>
    %58 = arith.maximumf %56, %57 : vector<64x128xf32>
    %c4_43 = arith.constant 4 : index
    %c0_44 = arith.constant 0 : index
    %c0_45 = arith.constant 0 : index
    %59 = vector.load %arg3[%c4_43, %c0_44, %c0_45] : memref<6x64x64xbf16, #tpu.memory_space<vmem>>, vector<1x64x64xbf16>
    %60 = vector.shape_cast %59 : vector<1x64x64xbf16> to vector<64x64xbf16>
    %c5 = arith.constant 5 : index
    %c0_46 = arith.constant 0 : index
    %c0_47 = arith.constant 0 : index
    %61 = vector.load %arg4[%c5, %c0_46, %c0_47] : memref<7x64x1xf32, #tpu.memory_space<vmem>>, vector<1x64x1xf32>
    %62 = vector.shape_cast %61 : vector<1x64x1xf32> to vector<64x1xf32>
    %63 = arith.truncf %58 : vector<64x128xf32> to vector<64x128xbf16>
    %cst_48 = arith.constant dense<0.000000e+00> : vector<64x128xf32>
    %64 = tpu.matmul %60, %63, %cst_48 {dimension_numbers = #tpu.dot_dimension_numbers<[1], [0], [0], [1], [0, 0, 1, 1], [], []>} : vector<64x64xbf16>, vector<64x128xbf16>, vector<64x128xf32> -> vector<64x128xf32>
    %65 = vector.broadcast %62 : vector<64x1xf32> to vector<64x128xf32>
    %66 = arith.addf %64, %65 : vector<64x128xf32>
    %cst_49 = arith.constant 0.000000e+00 : f32
    %67 = vector.broadcast %cst_49 : f32 to vector<64x128xf32>
    %68 = arith.maximumf %66, %67 : vector<64x128xf32>
    %c5_50 = arith.constant 5 : index
    %c0_51 = arith.constant 0 : index
    %c0_52 = arith.constant 0 : index
    %69 = vector.load %arg3[%c5_50, %c0_51, %c0_52] : memref<6x64x64xbf16, #tpu.memory_space<vmem>>, vector<1x16x64xbf16>
    %70 = vector.shape_cast %69 : vector<1x16x64xbf16> to vector<16x64xbf16>
    %c6 = arith.constant 6 : index
    %c0_53 = arith.constant 0 : index
    %c0_54 = arith.constant 0 : index
    %71 = vector.load %arg4[%c6, %c0_53, %c0_54] : memref<7x64x1xf32, #tpu.memory_space<vmem>>, vector<1x16x1xf32>
    %72 = vector.shape_cast %71 : vector<1x16x1xf32> to vector<16x1xf32>
    %73 = arith.truncf %68 : vector<64x128xf32> to vector<64x128xbf16>
    %cst_55 = arith.constant dense<0.000000e+00> : vector<16x128xf32>
    %74 = tpu.matmul %70, %73, %cst_55 {dimension_numbers = #tpu.dot_dimension_numbers<[1], [0], [0], [1], [0, 0, 1, 1], [], []>} : vector<16x64xbf16>, vector<64x128xbf16>, vector<16x128xf32> -> vector<16x128xf32>
    %75 = vector.broadcast %72 : vector<16x1xf32> to vector<16x128xf32>
    %76 = arith.addf %74, %75 : vector<16x128xf32>
    %77 = vector.extract_strided_slice %76 {offsets = [0, 0], sizes = [1, 128], strides = [1, 1]} : vector<16x128xf32> to vector<1x128xf32>
    %c0_56 = arith.constant 0 : index
    %c0_57 = arith.constant 0 : index
    %78 = vector.load %arg5[%c0_56, %c0_57] : memref<1x128xf32, #tpu.memory_space<vmem>>, vector<1x128xf32>
    tpu.vector_store %arg5[%c0_56, %c0_57], %77 {strides = array<i32>} : memref<1x128xf32, #tpu.memory_space<vmem>>, vector<1x128xf32>,
    return
  }
  func.func @transform_0(%arg0: i32) -> (i32, i32) {
    %c0_i32 = arith.constant 0 : i32
    %c0_i32_0 = arith.constant 0 : i32
    return %arg0, %c0_i32 : i32, i32
  }
  func.func @transform_1(%arg0: i32) -> (i32, i32, i32) {
    %c0_i32 = arith.constant 0 : i32
    %c0_i32_0 = arith.constant 0 : i32
    %c0_i32_1 = arith.constant 0 : i32
    %c0_i32_2 = arith.constant 0 : i32
    return %c0_i32, %c0_i32_0, %c0_i32_1 : i32, i32, i32
  }
  func.func @transform_2(%arg0: i32) -> (i32, i32, i32) {
    %c0_i32 = arith.constant 0 : i32
    %c0_i32_0 = arith.constant 0 : i32
    %c0_i32_1 = arith.constant 0 : i32
    %c0_i32_2 = arith.constant 0 : i32
    return %c0_i32, %c0_i32_0, %c0_i32_1 : i32, i32, i32
  }
  func.func @transform_3(%arg0: i32) -> (i32, i32, i32) {
    %c0_i32 = arith.constant 0 : i32
    %c0_i32_0 = arith.constant 0 : i32
    %c0_i32_1 = arith.constant 0 : i32
    %c0_i32_2 = arith.constant 0 : i32
    return %c0_i32, %c0_i32_0, %c0_i32_1 : i32, i32, i32
  }
  func.func @transform_4(%arg0: i32) -> (i32, i32) {
    %c0_i32 = arith.constant 0 : i32
    %c0_i32_0 = arith.constant 0 : i32
    return %c0_i32, %arg0 : i32, i32
  }
}

</mosaic_0001>

<bundles_post_ra>
// kernel: tpu_custom_call.1
= control target key start
LH: loop header
LB: loop body
LE: loop exit
PB: predicated region body
PF: predicated region fallthrough
CT: control target
= control target key end

     0   :  { %9 = vsyncpa [#allocation3], 0  ;;  %s2552_s0 = inlined_call_operand.vmem [shape: f32[1024,32], index: 0, kind: input, shape index: {}]   ;;  %s2553_s1 = inlined_call_operand.vmem [shape: bf16[2,64,32], index: 1, kind: input, shape index: {}]   ;;  %s2554_s2 = inlined_call_operand.vmem [shape: bf16[6,64,64], index: 2, kind: input, shape index: {}]   ;;  %s2555_s3 = inlined_call_operand.vmem [shape: f32[7,64,1], index: 3, kind: input, shape index: {}]   ;;  %s2556_s4 = inlined_call_operand.hbm [shape: f32[1,1024], index: 4, kind: output, shape index: {}]  }
   0x1   :  { %11 = vsyncpa [#allocation3 + $0x1], 0  ;;  %s2081_s15 = smov 0   ;;  %s2083_s16 = smov 0  }
   0x2   :  { %s2085_s17 = smov 0   ;;  %s2087_s18 = smov 0  }
   0x3 LB: > { %s1540_s19 = sadd.s32 4294967295, %s2050_s18   ;;  %s1541_s20 = sadd.s32 4294967294, %s2050_s18   ;;  %s2050_s18 = sphi %s2087_s18, %s2562_s18   ;;  %s2046_s17 = sphi %s2085_s17, %s2561_s17   ;;  %s2042_s16 = sphi %s2083_s16, %s2560_s16   ;;  %s2038_s15 = sphi %s2081_s15, %s2559_s15  }
   0x4   : > { %s2104_s21 = sadd.s32 1, %s2050_s18   ;;  %s113_s22 = sadd.s32 1, %s2046_s17 }
   0x5   : > { %s110_s23 = ssub.s32 %s2050_s18, %s2104_s21  ;;  %p123_p0 = scmp.ne.s32.totalorder %s2046_s17, %s2042_s16 }
   0x6   : > { %p111_p1 = scmp.eq.s32.totalorder %s110_s23, 0  ;;  %p124_p2 = scmp.eq.s32.totalorder %s1540_s19, 7 }
   0x7   : > { %p129_p3 = scmp.ne.s32.totalorder %s2042_s16, %s2038_s15  ;;  %p130_p4 = scmp.eq.s32.totalorder %s1541_s20, 7 }
   0x8   : > { %s2114_s24 = scalar_select %p111_p1, %s2046_s17, %s113_s22  }
   0x9   : > { %p2116_p5 = por %p124_p2, %p123_p0  ;;  %p2120_p6 = por %p130_p4, %p129_p3 }
   0xa   : > { %p1544_p7 = scmp.ge.s32.totalorder %s2050_s18, 1  ;;  %p166_p8 = scmp.lt.s32.totalorder %s2050_s18, 9 }
   0xc   : > { %p167_p9 = pnand %p1544_p7, %p166_p8 }
   0xd   : > { %s2126_s27 = sshll.u32 (!%p167_p9), %s1540_s19, 4  ;;  %s189_s12 = sand.u32 (!%p167_p9), 1, %s2042_s16  }
   0xe   : > { %170 = sbr.rel (%p167_p9) target bundleno = 1662 (0x67e), region = 36  ;;  %p192_p10 = scmp.lt.s32.totalorder (!%p167_p9), %s2126_s27, 127 }
   0xf   : > { %s2511_s23 = scalar_lea.hbm (!%p167_p9), %s2556_s4, %s2126_s27  ;;  %s1474_s28 = scalar_lea.sflag (!%p167_p9), [#allocation3], %s189_s12 }
  0x10   : > { %s2055_s30 = smov (!%p167_p9), [#allocation2]  }
  0x13   : > { %v236_v0 = vld [vmem:[%s2555_s3 + $0x30] sm:$0xff]  ;;  %v234_v1 = vld [vmem:[%s2555_s3 + $0x20] sm:$0xff]  ;;  %v2052_v2 = vmov 0   ;;  %v237_v3 = vld [vmem:[%s2555_s3 + $0x38] sm:$0xff]  ;;  %s193_s10 = scalar_select %p192_p10, %s2126_s27, 127  ;;  %vm298_vm0 = vcmask 261120  }
  0x14   : > { %1959 = vset.pattern.permute.xlu0 %v2052_v2  ;;  %1960 = vset.pattern.permute.xlu1 %v2052_v2  ;;  %v235_v4 = vld [vmem:[%s2555_s3 + $0x28] sm:$0xff]  ;;  %v1961_v5 = vld [vmem:[%s2553_s1] sm:$0xff]   ;;  %v232_v6 = vld [vmem:[%s2555_s3 + $0x10] sm:$0xff]  ;;  %vm489_vm1 = vcmask 523264   ;;  %vm2054_vm2 = vmmov 0  }
  0x15   : > { %270 = vperm.xlu0 %1959, %v236_v0   ;;  %260 = vperm.xlu1 %1960, %v234_v1   ;;  %s1546_s13 = sshll.u32 %s193_s10, 3  ;;  %v233_v14 = vld [vmem:[%s2555_s3 + $0x18] sm:$0xff]  ;;  %v230_v18 = vld [vmem:[%s2555_s3] sm:$0xff]  ;;  %v231_v19 = vld [vmem:[%s2555_s3 + $0x8] sm:$0xff] }
  0x16   : > { %1777 = vmatprep.mubr.msk.bf16.mxu0 %vm298_vm0, %v1961_v5  ;;  %s2149_s20 = scalar_lea.vmem %s2552_s0, %s1546_s13  ;;  %v1561_v22 = vld [vmem:[%s2555_s3 + $0x70] sm:$0xff]  ;;  %v1562_v25 = vld [vmem:[%s2555_s3 + $0x78] sm:$0xff]  ;;  %v1559_v30 = vld [vmem:[%s2555_s3 + $0x60] sm:$0xff]  ;;  %s190_s13 = scalar_lea.vmem [#allocation2], %s189_s12 }
  0x17   : > { %v212_v7 = vld [vmem:[%s2149_s20 + $0x70] sm:$0xff]  ;;  %v213_v8 = vld [vmem:[%s2149_s20 + $0x78] sm:$0xff]  ;;  %v2157_v9 = vld [vmem:[%s2149_s20 + $0x60] sm:$0xff]  ;;  %s1486_s14 = sshll.u32 %s190_s13, 4  ;;  %s2513_s14 = int_to_ptr.vmem [resolvable:$true] %s1486_s14 }
  0x18   : > { %v221_v10 = vpack.c.bf16 %v213_v8, %v212_v7  ;;  %v945_v11 = vmax.f32 %v212_v7, 0.0  ;;  %v946_v12 = vmax.f32 %v213_v8, 0.0  ;;  %v2160_v13 = vld [vmem:[%s2149_s20 + $0x68] sm:$0xff]  ;;  %v2179_v20 = vld [vmem:[%s2149_s20 + $0x50] sm:$0xff]  ;;  %v2182_v21 = vld [vmem:[%s2149_s20 + $0x58] sm:$0xff]  ;;  %s1990_s29 = scalar_lea.vmem %s2513_s14, 16 }
  0x19   : > { %275 = vperm.xlu0 %1959, %v237_v3   ;;  %265 = vperm.xlu1 %1960, %v235_v4   ;;  %v220_v15 = vpack.c.bf16 %v2160_v13, %v2157_v9  ;;  %v219_v24 = vpack.c.bf16 %v2182_v21, %v2179_v20  ;;  %v2194_v26 = vld [vmem:[%s2149_s20 + $0x40] sm:$0xff]  ;;  %v2197_v27 = vld [vmem:[%s2149_s20 + $0x48] sm:$0xff]  ;;  %v2200_v28 = vld [vmem:[%s2149_s20 + $0x30] sm:$0xff]  ;;  %p1991_p11 = scmp.ne.s32.totalorder %s2513_s14, %s1990_s29 }
  0x1a   : > { %1901 = vmatprep.subr.msk.bf16.mxu0 %vm298_vm0, %v221_v10  ;;  %v2168_v16 = vpack.c.bf16 %v946_v12, %v945_v11  ;;  %v333_v17 = vsel %vm298_vm0, %v221_v10, 0  ;;  %v2203_v29 = vld [vmem:[%s2149_s20 + $0x38] sm:$0xff]  ;;  %v1560_v31 = vld [vmem:[%s2555_s3 + $0x68] sm:$0xff]  ;;  %v218_v32 = vpack.c.bf16 %v2197_v27, %v2194_v26  ;;  %v1557_v34 = vld [vmem:[%s2555_s3 + $0x50] sm:$0xff] }
  0x1b   : > { %1762 = vmatpush3.bf16.xpose.msra.mxu0 %v333_v17  ;;  %v330_v23 = vsel %vm298_vm0, %v220_v15, 0  ;;  %v217_v33 = vpack.c.bf16 %v2203_v29, %v2200_v28  ;;  %v327_v35 = vsel %vm298_vm0, %v219_v24, 0  ;;  %v1558_v36 = vld [vmem:[%s2555_s3 + $0x58] sm:$0xff]  ;;  %v1555_v39 = vld [vmem:[%s2555_s3 + $0x40] sm:$0xff]  ;;  %v1556_v40 = vld [vmem:[%s2555_s3 + $0x48] sm:$0xff]  ;;  %p1992_p12 = pnand %p1991_p11, %p2116_p5 }
  0x1c   : > { %1902 = vmatprep.subr.msk.bf16.mxu0 %vm298_vm0, %v220_v15  ;;  %v324_v37 = vsel %vm298_vm0, %v218_v32, 0  ;;  %v1585_v41 = vld [vmem:[%s2555_s3 + $0xb0] sm:$0xff]  ;;  %v1586_v42 = vld [vmem:[%s2555_s3 + $0xb8] sm:$0xff]  ;;  %v1583_v43 = vld [vmem:[%s2555_s3 + $0xa0] sm:$0xff] }
  0x1d   : > { %250 = vperm.xlu0 %1959, %v232_v6   ;;  %255 = vperm.xlu1 %1960, %v233_v14   ;;  %v321_v38 = vsel %vm298_vm0, %v217_v33, 0  ;;  %v1584_v44 = vld [vmem:[%s2555_s3 + $0xa8] sm:$0xff]  ;;  %v2245_v45 = vld [vmem:[%s2149_s20 + $0x20] sm:$0xff]  ;;  %v1581_v47 = vld [vmem:[%s2555_s3 + $0x90] sm:$0xff]  ;;  %p1993_p13 = pneg %p1992_p12 }
  0x1e   : > { %v2248_v46 = vld [vmem:[%s2149_s20 + $0x28] sm:$0xff]  ;;  %v1582_v48 = vld [vmem:[%s2555_s3 + $0x98] sm:$0xff]  ;;  %v1579_v50 = vld [vmem:[%s2555_s3 + $0x80] sm:$0xff] }
  0x1f   : > { %v216_v49 = vpack.c.bf16 %v2248_v46, %v2245_v45  ;;  %v1580_v51 = vld [vmem:[%s2555_s3 + $0x88] sm:$0xff]  ;;  %v2267_v52 = vld [vmem:[%s2149_s20 + $0x10] sm:$0xff]  ;;  %v2270_v53 = vld [vmem:[%s2149_s20 + $0x18] sm:$0xff] }
  0x20   : > { %v1609_v54 = vld [vmem:[%s2555_s3 + $0xf0] sm:$0xff]  ;;  %v215_v56 = vpack.c.bf16 %v2270_v53, %v2267_v52  ;;  %v1610_v57 = vld [vmem:[%s2555_s3 + $0xf8] sm:$0xff]  ;;  %v1607_v58 = vld [vmem:[%s2555_s3 + $0xe0] sm:$0xff] }
  0x21   : > { %240 = vperm.xlu0 %1959, %v230_v18   ;;  %245 = vperm.xlu1 %1960, %v231_v19   ;;  %v318_v55 = vsel %vm298_vm0, %v216_v49, 0  ;;  %v1608_v59 = vld [vmem:[%s2555_s3 + $0xe8] sm:$0xff]  ;;  %v2289_v60 = vld [vmem:[%s2149_s20] sm:$0xff]  ;;  %v1605_v62 = vld [vmem:[%s2555_s3 + $0xd0] sm:$0xff] }
  0x22   : > { %v2292_v61 = vld [vmem:[%s2149_s20 + $0x8] sm:$0xff]  ;;  %v315_v63 = vsel %vm298_vm0, %v215_v56, 0  ;;  %v1606_v1 = vld [vmem:[%s2555_s3 + $0xd8] sm:$0xff]  ;;  %v1603_v2 = vld [vmem:[%s2555_s3 + $0xc0] sm:$0xff]  ;;  %s1994_s20 = sshll.u32 %s2055_s30, 4  ;;  %s1995_s20 = int_to_ptr.vmem [resolvable:$false] %s1994_s20 }
  0x23   : > { %1764 = vmatpush3.bf16.xpose.msra.mxu0 %v330_v23  ;;  %v214_v0 = vpack.c.bf16 %v2292_v61, %v2289_v60  ;;  %v1604_v3 = vld [vmem:[%s2555_s3 + $0xc8] sm:$0xff]  ;;  %v1633_v4 = vld [vmem:[%s2555_s3 + $0x130] sm:$0xff]  ;;  %v1634_v6 = vld [vmem:[%s2555_s3 + $0x138] sm:$0xff]  ;;  %s1996_s5 = scalar_lea.vmem %s1995_s20, 32  ;;  %p1997_p0 = scmp.lt.s32.totalorder %s2513_s14, %s1995_s20 }
  0x24   : > { %1903 = vmatprep.subr.msk.bf16.mxu0 %vm298_vm0, %v219_v24  ;;  %v1631_v7 = vld [vmem:[%s2555_s3 + $0x120] sm:$0xff]  ;;  %v1632_v8 = vld [vmem:[%s2555_s3 + $0x128] sm:$0xff]  ;;  %v1963_v11 = vld [vmem:[%s2553_s1 + $0x10] sm:$0xff]   ;;  %p1998_p1 = scmp.lt.s32.totalorder %s1996_s5, %s1990_s29 }
  0x25   : > { %461 = vperm.xlu0 %1959, %v1561_v22   ;;  %466 = vperm.xlu1 %1960, %v1562_v25   ;;  %v312_v5 = vsel %vm298_vm0, %v214_v0, 0  ;;  %v1962_v10 = vld [vmem:[%s2553_s1 + $0x8] sm:$0xff]   ;;  %v1629_v12 = vld [vmem:[%s2555_s3 + $0x110] sm:$0xff]  ;;  %v1630_v14 = vld [vmem:[%s2555_s3 + $0x118] sm:$0xff] }
  0x26   : > { %v1627_v15 = vld [vmem:[%s2555_s3 + $0x100] sm:$0xff]  ;;  %v1628_v17 = vld [vmem:[%s2555_s3 + $0x108] sm:$0xff]  ;;  %v1964_v18 = vld [vmem:[%s2553_s1 + $0x18] sm:$0xff]   ;;  %p1999_p2 = por %p1998_p1, %p1997_p0 }
  0x27   : > { %v1673_v19 = vld [vmem:[%s2555_s3 + $0x170] sm:$0xff]  ;;  %v1674_v22 = vld [vmem:[%s2555_s3 + $0x178] sm:$0xff]  ;;  %v1671_v23 = vld [vmem:[%s2555_s3 + $0x160] sm:$0xff] }
  0x28   : > { %v1672_v24 = vld [vmem:[%s2555_s3 + $0x168] sm:$0xff]  ;;  %v1669_v25 = vld [vmem:[%s2555_s3 + $0x150] sm:$0xff]  ;;  %p2000_p3 = pnand %p1999_p2, %p1993_p13 }
  0x29   : > { %451 = vperm.xlu0 %1959, %v1559_v30   ;;  %456 = vperm.xlu1 %1960, %v1560_v31   ;;  %v1670_v30 = vld [vmem:[%s2555_s3 + $0x158] sm:$0xff]  ;;  %v1667_v31 = vld [vmem:[%s2555_s3 + $0x140] sm:$0xff] }
  0x2b   : > { %1766 = vmatpush3.bf16.xpose.msra.mxu0 %v327_v35 }
  0x2c   : > { %1904 = vmatprep.subr.msk.bf16.mxu0 %vm298_vm0, %v218_v32  ;;  %v1668_v32 = vld [vmem:[%s2555_s3 + $0x148] sm:$0xff] }
  0x2d   : > { %441 = vperm.xlu0 %1959, %v1557_v34   ;;  %446 = vperm.xlu1 %1960, %v1558_v36   ;;  %v1965_v34 = vld [vmem:[%s2554_s2] sm:$0xff]  }
  0x2e   : > { %1793 = vmatprep.mubr.msk.bf16.mxu1 %vm489_vm1, %v1965_v34 }
  0x31   : > { %431 = vperm.xlu0 %1959, %v1555_v39   ;;  %436 = vperm.xlu1 %1960, %v1556_v40  }
  0x33   : > { %1768 = vmatpush3.bf16.xpose.msra.mxu0 %v324_v37 }
  0x34   : > { %1905 = vmatprep.subr.msk.bf16.mxu0 %vm298_vm0, %v217_v33  ;;  %v1685_v33 = vld [vmem:[%s2555_s3 + $0x180] sm:$0xff] }
  0x35   : > { %629 = vperm.xlu0 %1959, %v1585_v41   ;;  %634 = vperm.xlu1 %1960, %v1586_v42  }
  0x39   : > { %619 = vperm.xlu0 %1959, %v1583_v43   ;;  %624 = vperm.xlu1 %1960, %v1584_v44  }
  0x3b   : > { %1770 = vmatpush3.bf16.xpose.msra.mxu0 %v321_v38 }
  0x3c   : > { %1906 = vmatprep.subr.msk.bf16.mxu0 %vm298_vm0, %v216_v49 }
  0x3d   : > { %609 = vperm.xlu0 %1959, %v1581_v47   ;;  %614 = vperm.xlu1 %1960, %v1582_v48  }
  0x41   : > { %599 = vperm.xlu0 %1959, %v1579_v50   ;;  %604 = vperm.xlu1 %1960, %v1580_v51  }
  0x43   : > { %1772 = vmatpush3.bf16.xpose.msra.mxu0 %v318_v55 }
  0x44   : > { %1907 = vmatprep.subr.msk.bf16.mxu0 %vm298_vm0, %v215_v56 }
  0x45   : > { %796 = vperm.xlu0 %1959, %v1609_v54   ;;  %801 = vperm.xlu1 %1960, %v1610_v57  }
  0x49   : > { %786 = vperm.xlu0 %1959, %v1607_v58   ;;  %791 = vperm.xlu1 %1960, %v1608_v59  }
  0x4b   : > { %1774 = vmatpush3.bf16.xpose.msra.mxu0 %v315_v63 }
  0x4c   : > { %1908 = vmatprep.subr.msk.bf16.mxu0 %vm298_vm0, %v214_v0 }
  0x4d   : > { %776 = vperm.xlu0 %1959, %v1605_v62   ;;  %781 = vperm.xlu1 %1960, %v1606_v1  }
  0x51   : > { %766 = vperm.xlu0 %1959, %v1603_v2   ;;  %771 = vperm.xlu1 %1960, %v1604_v3  }
  0x53   : > { %1776 = vmatpush3.bf16.xpose.msra.mxu0 %v312_v5 }
  0x55   : > { %1214 = vperm.xlu0 %1959, %v1633_v4   ;;  %1219 = vperm.xlu1 %1960, %v1634_v6  }
  0x59   : > { %1204 = vperm.xlu0 %1959, %v1631_v7   ;;  %1209 = vperm.xlu1 %1960, %v1632_v8  }
  0x5a   : > { %1778 = vmatmul.mubr.msk.bf16.vlgmr.msra.gmra.mxu0 %vm298_vm0, %v1962_v10 }
  0x5b   : > { %1781 = vmatprep.mubr.msk.bf16.mxu0 %vm298_vm0, %v1963_v11 }
  0x5d   : > { %1194 = vperm.xlu0 %1959, %v1629_v12   ;;  %1199 = vperm.xlu1 %1960, %v1630_v14  }
  0x61   : > { %1184 = vperm.xlu0 %1959, %v1627_v15   ;;  %1189 = vperm.xlu1 %1960, %v1628_v17   ;;  %v1966_v15 = vld [vmem:[%s2554_s2 + $0x8] sm:$0xff]   ;;  %v1967_v17 = vld [vmem:[%s2554_s2 + $0x10] sm:$0xff]  }
  0x62   : > { %1782 = vmatmul.mubr.msk.bf16.gmra.mxu0 %vm298_vm0, %v1964_v18  ;;  %v1968_v18 = vld [vmem:[%s2554_s2 + $0x18] sm:$0xff]  }
  0x65   : > { %1292 = vperm.xlu0 %1959, %v1673_v19   ;;  %1297 = vperm.xlu1 %1960, %v1674_v22   ;;  %v1969_v19 = vld [vmem:[%s2554_s2 + $0x20] sm:$0xff]  }
  0x69   : > { %1282 = vperm.xlu0 %1959, %v1671_v23   ;;  %1287 = vperm.xlu1 %1960, %v1672_v24  }
  0x6d   : > { %1272 = vperm.xlu0 %1959, %v1669_v25   ;;  %1277 = vperm.xlu1 %1960, %v1670_v30  }
  0x71   : > { %1262 = vperm.xlu0 %1959, %v1667_v31   ;;  %1267 = vperm.xlu1 %1960, %v1668_v32  }
  0x75   : > { %1417 = vperm.xlu0 %1959, %v1685_v33  }
  0x90   : > { %v261_v35 = vpop.permute.xlu1 %260  ;;  %v271_v37 = vpop.permute.xlu0 %270 }
  0x94   : > { %v266_v40 = vpop.permute.xlu1 %265  ;;  %v276_v42 = vpop.permute.xlu0 %275 }
  0x98   : > { %v256_v48 = vpop.permute.xlu1 %255  ;;  %v251_v54 = vpop.permute.xlu0 %250 }
  0x9c   : > { %v246_v2 = vpop.permute.xlu1 %245  ;;  %v241_v6 = vpop.permute.xlu0 %240 }
  0xa0   : > { %v467_v22 = vpop.permute.xlu1 %466  ;;  %v462_v24 = vpop.permute.xlu0 %461 }
  0xa4   : > { %v457_v31 = vpop.permute.xlu1 %456  ;;  %v452_v33 = vpop.permute.xlu0 %451 }
 0x11a   : > { %v1779_v36 = vpop.f32.mrf.mxu0 }
 0x11b   : > { %v378_v62 = vadd.f32 %v1779_v36, %v251_v54 }
 0x11c   : > { %v369_v38 = vpop.f32.mrf.mxu0 }
 0x11d   : > { %v402_v7 = vmax.f32 %v378_v62, 0.0  ;;  %v370_v8 = vadd.f32 %v369_v38, %v241_v6  ;;  %v1972_v6 = vld [vmem:[%s2554_s2 + $0x38] sm:$0xff]  }
 0x11e   : > { %v1780_v39 = vpop.f32.mrf.mxu0 }
 0x11f   : > { %v381_v56 = vadd.f32 %v1780_v39, %v256_v48  ;;  %v400_v12 = vmax.f32 %v370_v8, 0.0 }
 0x120   : > { %v372_v41 = vpop.f32.mrf.mxu0 }
 0x121   : > { %v403_v3 = vmax.f32 %v381_v56, 0.0  ;;  %v373_v4 = vadd.f32 %v372_v41, %v246_v2  ;;  %v442_v41 = vpop.permute.xlu0 %441 }
 0x122   : > { %v1783_v43 = vpop.f32.mrf.mxu0 }
 0x123   : > { %v394_v47 = vadd.f32 %v1783_v43, %v271_v37  ;;  %v426_v10 = vpack.c.bf16 %v403_v3, %v402_v7  ;;  %v401_v11 = vmax.f32 %v373_v4, 0.0  ;;  %v447_v37 = vpop.permute.xlu1 %446  ;;  %v1970_v4 = vld [vmem:[%s2554_s2 + $0x28] sm:$0xff]   ;;  %v1973_v7 = vld [vmem:[%s2554_s2 + $0x40] sm:$0xff]  }
 0x124   : > { %v385_v44 = vpop.f32.mrf.mxu0 }
 0x125   : > { %v386_v50 = vadd.f32 %v385_v44, %v261_v35  ;;  %v406_v57 = vmax.f32 %v394_v47, 0.0  ;;  %v425_v14 = vpack.c.bf16 %v401_v11, %v400_v12 }
 0x126   : > { %v1784_v49 = vpop.f32.mrf.mxu0 }
 0x127   : > { %v397_v51 = vadd.f32 %v1784_v49, %v276_v42  ;;  %v404_v63 = vmax.f32 %v386_v50, 0.0 }
 0x128   : > { %v388_v55 = vpop.f32.mrf.mxu0 }
 0x129   : > { %v407_v58 = vmax.f32 %v397_v51, 0.0  ;;  %v389_v59 = vadd.f32 %v388_v55, %v266_v40  ;;  %v437_v55 = vpop.permute.xlu1 %436 }
 0x12b   : > { %v405_v0 = vmax.f32 %v389_v59, 0.0  ;;  %v428_v1 = vpack.c.bf16 %v407_v58, %v406_v57  ;;  %v432_v59 = vpop.permute.xlu0 %431 }
 0x12d   : > { %v427_v5 = vpack.c.bf16 %v405_v0, %v404_v63  ;;  %1785 = vmatprep.subr.bf16.mxu1 %v428_v1  ;;  %v635_v8 = vpop.permute.xlu1 %634 }
 0x12e   : > { %1786 = vmatpush3.bf16.msra.mxu1 %v428_v1 }
 0x12f   : > { %1787 = vmatprep.subr.bf16.mxu1 %v427_v5  ;;  %v630_v11 = vpop.permute.xlu0 %629 }
 0x132   : > { %1788 = vmatpush3.bf16.msra.mxu1 %v427_v5  ;;  %v1971_v5 = vld [vmem:[%s2554_s2 + $0x30] sm:$0xff]  }
 0x133   : > { %1789 = vmatprep.subr.bf16.mxu1 %v426_v10 }
 0x136   : > { %1790 = vmatpush3.bf16.msra.mxu1 %v426_v10 }
 0x137   : > { %1791 = vmatprep.subr.bf16.mxu1 %v425_v14 }
 0x13a   : > { %1792 = vmatpush3.bf16.msra.mxu1 %v425_v14 }
 0x13d   : > { %1794 = vmatmul.mubr.msk.bf16.vlgmr.msra.gmra.mxu1 %vm489_vm1, %v1966_v15  ;;  %v625_v15 = vpop.permute.xlu1 %624 }
 0x13e   : > { %1797 = vmatprep.mubr.msk.bf16.mxu1 %vm489_vm1, %v1967_v17 }
 0x145   : > { %1798 = vmatmul.mubr.msk.bf16.gmra.mxu1 %vm489_vm1, %v1968_v18  ;;  %v620_v18 = vpop.permute.xlu0 %619 }
 0x146   : > { %1809 = vmatprep.mubr.msk.bf16.mxu1 %vm489_vm1, %v1969_v19 }
 0x1fd   : > { %v1795_v23 = vpop.f32.mrf.mxu1 }
 0x1fe   : > { %v545_v49 = vadd.f32 %v1795_v23, %v442_v41 }
 0x1ff   : > { %v536_v25 = vpop.f32.mrf.mxu1 }
 0x200   : > { %v569_v62 = vmax.f32 %v545_v49, 0.0  ;;  %v537_v63 = vadd.f32 %v536_v25, %v432_v59  ;;  %v1974_v59 = vld [vmem:[%s2554_s2 + $0x48] sm:$0xff]  }
 0x201   : > { %v1796_v30 = vpop.f32.mrf.mxu1 }
 0x202   : > { %v548_v43 = vadd.f32 %v1796_v30, %v447_v37  ;;  %v567_v2 = vmax.f32 %v537_v63, 0.0  ;;  %v1018_v63 = vsel %vm298_vm0, %v2168_v16, 0 }
 0x203   : > { %v539_v32 = vpop.f32.mrf.mxu1 }
 0x204   : > { %v570_v56 = vmax.f32 %v548_v43, 0.0  ;;  %v540_v57 = vadd.f32 %v539_v32, %v437_v55  ;;  %v610_v32 = vpop.permute.xlu0 %609 }
 0x205   : > { %v1799_v34 = vpop.f32.mrf.mxu1 }
 0x206   : > { %v561_v36 = vadd.f32 %v1799_v34, %v462_v24  ;;  %v594_v0 = vpack.c.bf16 %v570_v56, %v569_v62  ;;  %v568_v1 = vmax.f32 %v540_v57, 0.0  ;;  %v615_v24 = vpop.permute.xlu1 %614  ;;  %v943_v57 = vmax.f32 %v2157_v9, 0.0  ;;  %v1975_v62 = vld [vmem:[%s2554_s2 + $0x50] sm:$0xff]  }
 0x207   : > { %v552_v35 = vpop.f32.mrf.mxu1  ;;  %v941_v9 = vmax.f32 %v2179_v20, 0.0 }
 0x208   : > { %v553_v39 = vadd.f32 %v552_v35, %v452_v33  ;;  %v573_v44 = vmax.f32 %v561_v36, 0.0  ;;  %v593_v3 = vpack.c.bf16 %v568_v1, %v567_v2  ;;  %v1976_v1 = vld [vmem:[%s2554_s2 + $0x58] sm:$0xff]  }
 0x209   : > { %v1800_v38 = vpop.f32.mrf.mxu1 }
 0x20a   : > { %v564_v40 = vadd.f32 %v1800_v38, %v467_v22  ;;  %v571_v50 = vmax.f32 %v553_v39, 0.0 }
 0x20b   : > { %v555_v42 = vpop.f32.mrf.mxu1 }
 0x20c   : > { %v574_v47 = vmax.f32 %v564_v40, 0.0  ;;  %v556_v48 = vadd.f32 %v555_v42, %v457_v31  ;;  %v605_v42 = vpop.permute.xlu1 %604 }
 0x20e   : > { %v596_v51 = vpack.c.bf16 %v574_v47, %v573_v44  ;;  %v572_v54 = vmax.f32 %v556_v48, 0.0  ;;  %v600_v48 = vpop.permute.xlu0 %599 }
 0x210   : > { %v595_v58 = vpack.c.bf16 %v572_v54, %v571_v50  ;;  %1801 = vmatprep.subr.bf16.mxu1 %v596_v51 }
 0x211   : > { %1802 = vmatpush3.bf16.msra.mxu1 %v596_v51 }
 0x212   : > { %1803 = vmatprep.subr.bf16.mxu1 %v595_v58 }
 0x215   : > { %1804 = vmatpush3.bf16.msra.mxu1 %v595_v58  ;;  %v944_v58 = vmax.f32 %v2160_v13, 0.0  ;;  %v942_v13 = vmax.f32 %v2182_v21, 0.0  ;;  %v937_v21 = vmax.f32 %v2200_v28, 0.0 }
 0x216   : > { %1805 = vmatprep.subr.bf16.mxu1 %v594_v0 }
 0x219   : > { %1806 = vmatpush3.bf16.msra.mxu1 %v594_v0  ;;  %v953_v0 = vpack.c.bf16 %v944_v58, %v943_v57 }
 0x21a   : > { %1807 = vmatprep.subr.bf16.mxu1 %v593_v3 }
 0x21b   : > { %v1015_v2 = vsel %vm298_vm0, %v953_v0, 0 }
 0x21d   : > { %1808 = vmatpush3.bf16.msra.mxu1 %v593_v3  ;;  %v952_v3 = vpack.c.bf16 %v942_v13, %v941_v9 }
 0x21f   : > { %v1012_v20 = vsel %vm298_vm0, %v952_v3, 0 }
 0x220   : > { %1810 = vmatmul.mubr.msk.bf16.vlgmr.msra.gmra.mxu1 %vm489_vm1, %v1970_v4  ;;  %v940_v4 = vmax.f32 %v2197_v27, 0.0  ;;  %v935_v27 = vmax.f32 %v2245_v45, 0.0  ;;  %v931_v45 = vmax.f32 %v2289_v60, 0.0  ;;  %v1979_v60 = vld [vmem:[%s2554_s2 + $0x60] sm:$0xff]  }
 0x221   : > { %1813 = vmatprep.mubr.msk.bf16.mxu1 %vm489_vm1, %v1971_v5  ;;  %1865 = vmatprep.mubr.msk.bf16.mxu0 %vm489_vm1, %v1979_v60 }
 0x228   : > { %1814 = vmatmul.mubr.msk.bf16.gmra.mxu1 %vm489_vm1, %v1972_v6  ;;  %v938_v6 = vmax.f32 %v2203_v29, 0.0  ;;  %v933_v29 = vmax.f32 %v2267_v52, 0.0  ;;  %v1977_v52 = vld [vmem:[%s2553_s1 + $0x20] sm:$0xff]  }
 0x229   : > { %1825 = vmatprep.mubr.msk.bf16.mxu1 %vm489_vm1, %v1973_v7 }
 0x2e0   : > { %v1811_v10 = vpop.f32.mrf.mxu1 }
 0x2e1   : > { %v712_v38 = vadd.f32 %v1811_v10, %v610_v32  ;;  %v936_v10 = vmax.f32 %v2248_v46, 0.0  ;;  %v932_v46 = vmax.f32 %v2292_v61, 0.0  ;;  %v1981_v61 = vld [vmem:[%s2553_s1 + $0x30] sm:$0xff]  }
 0x2e2   : > { %v703_v12 = vpop.f32.mrf.mxu1 }
 0x2e3   : > { %v736_v49 = vmax.f32 %v712_v38, 0.0  ;;  %v704_v50 = vadd.f32 %v703_v12, %v600_v48  ;;  %v934_v12 = vmax.f32 %v2270_v53, 0.0  ;;  %v1978_v53 = vld [vmem:[%s2553_s1 + $0x28] sm:$0xff]  }
 0x2e4   : > { %v1812_v14 = vpop.f32.mrf.mxu1 }
 0x2e5   : > { %v715_v34 = vadd.f32 %v1812_v14, %v615_v24  ;;  %v734_v55 = vmax.f32 %v704_v50, 0.0  ;;  %v948_v14 = vpack.c.bf16 %v934_v12, %v933_v29  ;;  %v797_v24 = vpop.permute.xlu0 %796 }
 0x2e6   : > { %v706_v17 = vpop.f32.mrf.mxu1 }
 0x2e7   : > { %v737_v43 = vmax.f32 %v715_v34, 0.0  ;;  %v707_v44 = vadd.f32 %v706_v17, %v605_v42  ;;  %v947_v17 = vpack.c.bf16 %v932_v46, %v931_v45 }
 0x2e8   : > { %v1815_v19 = vpop.f32.mrf.mxu1 }
 0x2e9   : > { %v728_v23 = vadd.f32 %v1815_v19, %v630_v11  ;;  %v761_v51 = vpack.c.bf16 %v737_v43, %v736_v49  ;;  %v735_v54 = vmax.f32 %v707_v44, 0.0  ;;  %v949_v11 = vpack.c.bf16 %v936_v10, %v935_v27  ;;  %v1982_v19 = vld [vmem:[%s2553_s1 + $0x38] sm:$0xff]  }
 0x2ea   : > { %v719_v22 = vpop.f32.mrf.mxu1 }
 0x2eb   : > { %v720_v30 = vadd.f32 %v719_v22, %v620_v18  ;;  %v740_v35 = vmax.f32 %v728_v23, 0.0  ;;  %v760_v56 = vpack.c.bf16 %v735_v54, %v734_v55  ;;  %v1003_v28 = vsel %vm298_vm0, %v949_v11, 0  ;;  %v802_v22 = vpop.permute.xlu1 %801 }
 0x2ec   : > { %v1816_v25 = vpop.f32.mrf.mxu1  ;;  %v997_v18 = vsel %vm298_vm0, %v947_v17, 0 }
 0x2ed   : > { %v731_v31 = vadd.f32 %v1816_v25, %v635_v8  ;;  %v738_v39 = vmax.f32 %v720_v30, 0.0  ;;  %v950_v8 = vpack.c.bf16 %v938_v6, %v937_v21 }
 0x2ee   : > { %v722_v33 = vpop.f32.mrf.mxu1 }
 0x2ef   : > { %v741_v36 = vmax.f32 %v731_v31, 0.0  ;;  %v723_v37 = vadd.f32 %v722_v33, %v625_v15  ;;  %v1000_v15 = vsel %vm298_vm0, %v948_v14, 0  ;;  %v792_v31 = vpop.permute.xlu1 %791  ;;  %v787_v33 = vpop.permute.xlu0 %786 }
 0x2f1   : > { %v763_v40 = vpack.c.bf16 %v741_v36, %v740_v35  ;;  %v739_v41 = vmax.f32 %v723_v37, 0.0 }
 0x2f3   : > { %v762_v47 = vpack.c.bf16 %v739_v41, %v738_v39  ;;  %1817 = vmatprep.subr.bf16.mxu1 %v763_v40  ;;  %v782_v37 = vpop.permute.xlu1 %781  ;;  %v777_v41 = vpop.permute.xlu0 %776 }
 0x2f4   : > { %1818 = vmatpush3.bf16.msra.mxu1 %v763_v40 }
 0x2f5   : > { %1819 = vmatprep.subr.bf16.mxu1 %v762_v47 }
 0x2f7   : > { %v772_v55 = vpop.permute.xlu1 %771 }
 0x2f8   : > { %1820 = vmatpush3.bf16.msra.mxu1 %v762_v47 }
 0x2f9   : > { %1821 = vmatprep.subr.bf16.mxu1 %v761_v51 }
 0x2fc   : > { %1822 = vmatpush3.bf16.msra.mxu1 %v761_v51 }
 0x2fd   : > { %1823 = vmatprep.subr.bf16.mxu1 %v760_v56 }
 0x300   : > { %1824 = vmatpush3.bf16.msra.mxu1 %v760_v56 }
 0x301   : > { %1909 = vmatprep.subr.msk.bf16.mxu1 %vm298_vm0, %v2168_v16  ;;  %v939_v16 = vmax.f32 %v2194_v26, 0.0  ;;  %v1006_v26 = vsel %vm298_vm0, %v950_v8, 0 }
 0x303   : > { %1826 = vmatmul.mubr.msk.bf16.vlgmr.msra.gmra.mxu1 %vm489_vm1, %v1974_v59  ;;  %v951_v5 = vpack.c.bf16 %v940_v4, %v939_v16  ;;  %v767_v59 = vpop.permute.xlu0 %766  ;;  %v1984_v16 = vld [vmem:[%s2554_s2 + $0x78] sm:$0xff]   ;;  %v1985_v4 = vld [vmem:[%s2554_s2 + $0x80] sm:$0xff]  }
 0x304   : > { %1829 = vmatprep.mubr.msk.bf16.mxu1 %vm489_vm1, %v1975_v62  ;;  %1834 = vmatpush3.bf16.xpose.msra.mxu1 %v1018_v63 }
 0x305   : > { %1910 = vmatprep.subr.msk.bf16.mxu1 %vm298_vm0, %v953_v0  ;;  %v1009_v7 = vsel %vm298_vm0, %v951_v5, 0 }
 0x307   : > { %v1215_v10 = vpop.permute.xlu0 %1214 }
 0x30b   : > { %1830 = vmatmul.mubr.msk.bf16.gmra.mxu1 %vm489_vm1, %v1976_v1 }
 0x30c   : > { %1836 = vmatpush3.bf16.xpose.msra.mxu1 %v1015_v2  ;;  %1849 = vmatprep.mubr.msk.bf16.mxu1 %vm298_vm0, %v1977_v52  ;;  %v1980_v2 = vld [vmem:[%s2554_s2 + $0x68] sm:$0xff]  }
 0x30d   : > { %1911 = vmatprep.subr.msk.bf16.mxu1 %vm298_vm0, %v952_v3  ;;  %v1983_v3 = vld [vmem:[%s2554_s2 + $0x70] sm:$0xff]  }
 0x314   : > { %1838 = vmatpush3.bf16.xpose.msra.mxu1 %v1012_v20 }
 0x315   : > { %1912 = vmatprep.subr.msk.bf16.mxu1 %vm298_vm0, %v951_v5 }
 0x31c   : > { %1840 = vmatpush3.bf16.xpose.msra.mxu1 %v1009_v7 }
 0x31d   : > { %1913 = vmatprep.subr.msk.bf16.mxu1 %vm298_vm0, %v950_v8  ;;  %v1220_v8 = vpop.permute.xlu1 %1219 }
 0x321   : > { %v1210_v12 = vpop.permute.xlu1 %1209 }
 0x324   : > { %1842 = vmatpush3.bf16.xpose.msra.mxu1 %v1006_v26 }
 0x325   : > { %1914 = vmatprep.subr.msk.bf16.mxu1 %vm298_vm0, %v949_v11  ;;  %v1200_v60 = vpop.permute.xlu1 %1199 }
 0x32c   : > { %1844 = vmatpush3.bf16.xpose.msra.mxu1 %v1003_v28 }
 0x32d   : > { %1915 = vmatprep.subr.msk.bf16.mxu1 %vm298_vm0, %v948_v14 }
 0x334   : > { %1846 = vmatpush3.bf16.xpose.msra.mxu1 %v1000_v15  ;;  %v1205_v15 = vpop.permute.xlu0 %1204 }
 0x335   : > { %1916 = vmatprep.subr.msk.bf16.mxu1 %vm298_vm0, %v947_v17 }
 0x33c   : > { %1848 = vmatpush3.bf16.xpose.msra.mxu1 %v997_v18 }
 0x343   : > { %1850 = vmatmul.mubr.msk.bf16.vlgmr.msra.gmra.mxu1 %vm298_vm0, %v1978_v53 }
 0x344   : > { %1853 = vmatprep.mubr.msk.bf16.mxu1 %vm298_vm0, %v1981_v61 }
 0x34b   : > { %1854 = vmatmul.mubr.msk.bf16.gmra.mxu1 %vm298_vm0, %v1982_v19 }
 0x3c3   : > { %v1827_v23 = vpop.f32.mrf.mxu1 }
 0x3c4   : > { %v879_v49 = vadd.f32 %v1827_v23, %v777_v41 }
 0x3c5   : > { %v870_v25 = vpop.f32.mrf.mxu1 }
 0x3c6   : > { %v903_v62 = vmax.f32 %v879_v49, 0.0  ;;  %v871_v63 = vadd.f32 %v870_v25, %v767_v59  ;;  %v1987_v59 = vld [vmem:[%s2554_s2 + $0x90] sm:$0xff]  }
 0x3c7   : > { %v1828_v30 = vpop.f32.mrf.mxu1 }
 0x3c8   : > { %v882_v43 = vadd.f32 %v1828_v30, %v782_v37  ;;  %v901_v13 = vmax.f32 %v871_v63, 0.0  ;;  %v2053_v63 = vmov 0.0  }
 0x3c9   : > { %v873_v32 = vpop.f32.mrf.mxu1 }
 0x3ca   : > { %v904_v56 = vmax.f32 %v882_v43, 0.0  ;;  %v874_v57 = vadd.f32 %v873_v32, %v772_v55  ;;  %v1195_v32 = vpop.permute.xlu0 %1194  ;;  %v1190_v43 = vpop.permute.xlu1 %1189 }
 0x3cb   : > { %v1831_v34 = vpop.f32.mrf.mxu1 }
 0x3cc   : > { %v895_v36 = vadd.f32 %v1831_v34, %v797_v24  ;;  %v928_v0 = vpack.c.bf16 %v904_v56, %v903_v62  ;;  %v902_v9 = vmax.f32 %v874_v57, 0.0  ;;  %v1988_v62 = vld [vmem:[%s2554_s2 + $0x98] sm:$0xff]  }
 0x3cd   : > { %v886_v35 = vpop.f32.mrf.mxu1 }
 0x3ce   : > { %v887_v39 = vadd.f32 %v886_v35, %v787_v33  ;;  %v907_v44 = vmax.f32 %v895_v36, 0.0  ;;  %v927_v1 = vpack.c.bf16 %v902_v9, %v901_v13  ;;  %v1185_v49 = vpop.permute.xlu0 %1184  ;;  %v1298_v9 = vpop.permute.xlu1 %1297 }
 0x3cf   : > { %v1832_v38 = vpop.f32.mrf.mxu1 }
 0x3d0   : > { %v898_v40 = vadd.f32 %v1832_v38, %v802_v22  ;;  %v905_v50 = vmax.f32 %v887_v39, 0.0 }
 0x3d1   : > { %v889_v42 = vpop.f32.mrf.mxu1 }
 0x3d2   : > { %v908_v47 = vmax.f32 %v898_v40, 0.0  ;;  %v890_v48 = vadd.f32 %v889_v42, %v792_v31 }
 0x3d4   : > { %v930_v51 = vpack.c.bf16 %v908_v47, %v907_v44  ;;  %v906_v54 = vmax.f32 %v890_v48, 0.0 }
 0x3d6   : > { %v929_v58 = vpack.c.bf16 %v906_v54, %v905_v50  ;;  %1857 = vmatprep.subr.bf16.mxu0 %v930_v51 }
 0x3d7   : > { %1858 = vmatpush3.bf16.msra.mxu0 %v930_v51 }
 0x3d8   : > { %1859 = vmatprep.subr.bf16.mxu0 %v929_v58 }
 0x3db   : > { %1860 = vmatpush3.bf16.msra.mxu0 %v929_v58  ;;  %v1986_v58 = vld [vmem:[%s2554_s2 + $0x88] sm:$0xff]  }
 0x3dc   : > { %1861 = vmatprep.subr.bf16.mxu0 %v928_v0 }
 0x3df   : > { %1862 = vmatpush3.bf16.msra.mxu0 %v928_v0 }
 0x3e0   : > { %1863 = vmatprep.subr.bf16.mxu0 %v927_v1 }
 0x3e3   : > { %1864 = vmatpush3.bf16.msra.mxu0 %v927_v1  ;;  %v1293_v1 = vpop.permute.xlu0 %1292 }
 0x3e6   : > { %1866 = vmatmul.mubr.msk.bf16.vlgmr.msra.gmra.mxu0 %vm489_vm1, %v1980_v2 }
 0x3e7   : > { %1869 = vmatprep.mubr.msk.bf16.mxu0 %vm489_vm1, %v1983_v3 }
 0x3ee   : > { %1870 = vmatmul.mubr.msk.bf16.gmra.mxu0 %vm489_vm1, %v1984_v16  ;;  %v1288_v16 = vpop.permute.xlu1 %1287 }
 0x3ef   : > { %1881 = vmatprep.mubr.msk.bf16.mxu0 %vm489_vm1, %v1985_v4 }
 0x403   : > { %v1851_v20 = vpop.f32.mrf.mxu1 }
 0x405   : > { %v1054_v5 = vpop.f32.mrf.mxu1 }
 0x407   : > { %v1852_v21 = vpop.f32.mrf.mxu1 }
 0x409   : > { %v1057_v6 = vpop.f32.mrf.mxu1 }
 0x40b   : > { %v1855_v26 = vpop.f32.mrf.mxu1 }
 0x40d   : > { %v1070_v28 = vpop.f32.mrf.mxu1 }
 0x40f   : > { %v1856_v46 = vpop.f32.mrf.mxu1 }
 0x411   : > { %v1073_v23 = vpop.f32.mrf.mxu1 }
 0x4a6   : > { %v1867_v7 = vpop.f32.mrf.mxu0 }
 0x4a7   : > { %v1160_v22 = vadd.f32 %v1867_v7, %v1851_v20  ;;  %v1283_v20 = vpop.permute.xlu0 %1282 }
 0x4a8   : > { %v1151_v27 = vpop.f32.mrf.mxu0 }
 0x4a9   : > { %v1224_v38 = vadd.f32 %v1195_v32, %v1160_v22  ;;  %v1152_v39 = vadd.f32 %v1151_v27, %v1054_v5 }
 0x4aa   : > { %v1868_v11 = vpop.f32.mrf.mxu0 }
 0x4ab   : > { %v1163_v52 = vadd.f32 %v1868_v11, %v1852_v21  ;;  %v1232_v50 = vmax.f32 %v1224_v38, 0.0  ;;  %v1222_v51 = vadd.f32 %v1185_v49, %v1152_v39 }
 0x4ac   : > { %v1154_v29 = vpop.f32.mrf.mxu0 }
 0x4ad   : > { %v1225_v33 = vadd.f32 %v1200_v60, %v1163_v52  ;;  %v1155_v34 = vadd.f32 %v1154_v29, %v1057_v6  ;;  %v1230_v56 = vmax.f32 %v1222_v51, 0.0  ;;  %v1273_v29 = vpop.permute.xlu0 %1272 }
 0x4ae   : > { %v1871_v14 = vpop.f32.mrf.mxu0 }
 0x4af   : > { %v1176_v45 = vadd.f32 %v1871_v14, %v1855_v26  ;;  %v1233_v44 = vmax.f32 %v1225_v33, 0.0  ;;  %v1223_v47 = vadd.f32 %v1190_v43, %v1155_v34 }
 0x4b0   : > { %v1167_v17 = vpop.f32.mrf.mxu0 }
 0x4b1   : > { %v1168_v18 = vadd.f32 %v1167_v17, %v1070_v28  ;;  %v1228_v61 = vadd.f32 %v1215_v10, %v1176_v45  ;;  %v1231_v54 = vmax.f32 %v1223_v47, 0.0  ;;  %v1257_v55 = vpack.c.bf16 %v1233_v44, %v1232_v50  ;;  %v1263_v60 = vpop.permute.xlu0 %1262 }
 0x4b2   : > { %v1872_v53 = vpop.f32.mrf.mxu0 }
 0x4b3   : > { %v1179_v19 = vadd.f32 %v1872_v53, %v1856_v46  ;;  %v1226_v25 = vadd.f32 %v1205_v15, %v1168_v18  ;;  %v1236_v35 = vmax.f32 %v1228_v61, 0.0  ;;  %v1256_v57 = vpack.c.bf16 %v1231_v54, %v1230_v56 }
 0x4b4   : > { %v1170_v24 = vpop.f32.mrf.mxu0 }
 0x4b5   : > { %v1229_v30 = vadd.f32 %v1220_v8, %v1179_v19  ;;  %v1171_v31 = vadd.f32 %v1170_v24, %v1073_v23  ;;  %v1234_v40 = vmax.f32 %v1226_v25, 0.0  ;;  %v1278_v8 = vpop.permute.xlu1 %1277 }
 0x4b7   : > { %v1237_v36 = vmax.f32 %v1229_v30, 0.0  ;;  %v1227_v37 = vadd.f32 %v1210_v12, %v1171_v31  ;;  %v1989_v30 = vld [vmem:[%s2554_s2 + $0xa0] sm:$0xff]   ;;  %v1418_v31 = vpop.permute.xlu0 %1417 }
 0x4b9   : > { %v1235_v41 = vmax.f32 %v1227_v37, 0.0  ;;  %v1259_v42 = vpack.c.bf16 %v1237_v36, %v1236_v35  ;;  %v1268_v17 = vpop.permute.xlu1 %1267 }
 0x4bb   : > { %1873 = vmatprep.subr.bf16.mxu0 %v1259_v42  ;;  %v1258_v48 = vpack.c.bf16 %v1235_v41, %v1234_v40 }
 0x4bc   : > { %1874 = vmatpush3.bf16.msra.mxu0 %v1259_v42 }
 0x4bd   : > { %1875 = vmatprep.subr.bf16.mxu0 %v1258_v48 }
 0x4c0   : > { %1876 = vmatpush3.bf16.msra.mxu0 %v1258_v48 }
 0x4c1   : > { %1877 = vmatprep.subr.bf16.mxu0 %v1257_v55 }
 0x4c4   : > { %1878 = vmatpush3.bf16.msra.mxu0 %v1257_v55 }
 0x4c5   : > { %1879 = vmatprep.subr.bf16.mxu0 %v1256_v57 }
 0x4c8   : > { %1880 = vmatpush3.bf16.msra.mxu0 %v1256_v57 }
 0x4c9   : > { %1889 = vmatprep.subr.bf16.mxu0 %v2053_v63 }
 0x4cb   : > { %1882 = vmatmul.mubr.msk.bf16.vlgmr.msra.gmra.mxu0 %vm489_vm1, %v1986_v58 }
 0x4cc   : > { %1885 = vmatprep.mubr.msk.bf16.mxu0 %vm489_vm1, %v1987_v59 }
 0x4d3   : > { %1886 = vmatmul.mubr.msk.bf16.gmra.mxu0 %vm489_vm1, %v1988_v62 }
 0x4d4   : > { %1897 = vmatprep.mubr.msk.bf16.mxu0 %vm2054_vm2, %v2053_v63 }
 0x58b   : > { %v1883_v0 = vpop.f32.mrf.mxu0 }
 0x58c   : > { %v1375_v45 = vadd.f32 %v1883_v0, %v1273_v29 }
 0x58d   : > { %v1366_v13 = vpop.f32.mrf.mxu0 }
 0x58e   : > { %v1399_v61 = vmax.f32 %v1375_v45, 0.0  ;;  %v1367_v19 = vadd.f32 %v1366_v13, %v1263_v60 }
 0x58f   : > { %v1884_v2 = vpop.f32.mrf.mxu0 }
 0x590   : > { %v1378_v12 = vadd.f32 %v1884_v2, %v1278_v8  ;;  %v1397_v24 = vmax.f32 %v1367_v19, 0.0 }
 0x591   : > { %v1369_v3 = vpop.f32.mrf.mxu0 }
 0x592   : > { %v1400_v18 = vmax.f32 %v1378_v12, 0.0  ;;  %v1370_v52 = vadd.f32 %v1369_v3, %v1268_v17 }
 0x593   : > { %v1887_v4 = vpop.f32.mrf.mxu0 }
 0x594   : > { %v1391_v21 = vadd.f32 %v1887_v4, %v1293_v1  ;;  %v1412_v22 = vpack.c.bf16 %v1400_v18, %v1399_v61  ;;  %v1398_v23 = vmax.f32 %v1370_v52, 0.0 }
 0x595   : > { %v1382_v5 = vpop.f32.mrf.mxu0 }
 0x596   : > { %v1403_v27 = vmax.f32 %v1391_v21, 0.0  ;;  %v1383_v10 = vadd.f32 %v1382_v5, %v1283_v20  ;;  %v1411_v25 = vpack.c.bf16 %v1398_v23, %v1397_v24 }
 0x597   : > { %v1888_v6 = vpop.f32.mrf.mxu0 }
 0x598   : > { %v1394_v7 = vadd.f32 %v1888_v6, %v1298_v9  ;;  %v1401_v46 = vmax.f32 %v1383_v10, 0.0 }
 0x599   : > { %v1385_v26 = vpop.f32.mrf.mxu0 }
 0x59a   : > { %v1404_v11 = vmax.f32 %v1394_v7, 0.0  ;;  %v1386_v28 = vadd.f32 %v1385_v26, %v1288_v16 }
 0x59c   : > { %v1414_v14 = vpack.c.bf16 %v1404_v11, %v1403_v27  ;;  %v1402_v15 = vmax.f32 %v1386_v28, 0.0 }
 0x59e   : > { %1890 = vmatpush3.bf16.msra.mxu0 %v1414_v14  ;;  %v1413_v53 = vpack.c.bf16 %v1402_v15, %v1401_v46 }
 0x59f   : > { %1891 = vmatprep.subr.bf16.mxu0 %v2053_v63 }
 0x5a2   : > { %1892 = vmatpush3.bf16.msra.mxu0 %v1413_v53 }
 0x5a3   : > { %1893 = vmatprep.subr.bf16.mxu0 %v2053_v63 }
 0x5a6   : > { %1894 = vmatpush3.bf16.msra.mxu0 %v1412_v22 }
 0x5a7   : > { %1895 = vmatprep.subr.bf16.mxu0 %v2053_v63 }
 0x5aa   : > { %1896 = vmatpush3.bf16.msra.mxu0 %v1411_v25 }
 0x5ad   : > { %1898 = vmatmul.mubr.msk.bf16.vlgmr.msra.gmra.mxu0 %vm489_vm1, %v1989_v30 }
 0x66d   : > { %v1466_v32 = vpop.f32.mrf.mxu0 }
 0x66e   : > { %v1467_v33 = vadd.f32 %v1466_v32, %v1418_v31 }
 0x66f   : > { %v1899_v34 = vpop.f32.mrf.mxu0 }
 0x670   : > { %1472 = vst [vmem:[%s190_s13] sm:$0x1] %v1467_v33 }
 0x671   : > { %v1469_v35 = vpop.f32.mrf.mxu0 }
 0x672   : > { %2003 = shalt.err (!%p2000_p3)
}
 0x673   : > { %s2004_s27 = scalar_lea.hbm %s2511_s23, 16  ;;  %s2008_s8 = scalar_lea.hbm %s2556_s4, 128 }
 0x674   : > { %p2005_p4 = scmp.ne.s32.totalorder %s2511_s23, %s2004_s27  ;;  %p2009_p9 = scmp.lt.s32.totalorder %s2511_s23, %s2556_s4 }
 0x675   : > { %p2010_p10 = scmp.lt.s32.totalorder %s2008_s8, %s2004_s27 }
 0x676   : > { %p2006_p7 = pnand %p2005_p4, %p2116_p5 }
 0x677   : > { %p2011_p11 = por %p2010_p10, %p2009_p9 }
 0x678   : > { %p2007_p8 = pneg %p2006_p7 }
 0x67a   : > { %p2012_p12 = pnand %p2011_p11, %p2007_p8 }
 0x67c   : > { %2015 = shalt.err (!%p2012_p12)
}
 0x67d   : > { %1917 = dma.vmem_to_hbm [thread:$0]  (%p2116_p5), %s2513_s14, 16, %s2511_s23, %s1474_s28   ;;  %v1900_v36 = vpop.f32.mrf.mxu0 }
 0x67e PF: > { %p1923_p13 = scmp.ge.s32.totalorder %s2050_s18, 2  ;;  %s1498_s11 = sand.u32 1, %s2038_s15  }
 0x67f   : > { %s1499_s12 = scalar_lea.sflag [#allocation3], %s1498_s11 }
 0x680   : > { %p1920_p0 = pnand %p1923_p13, %p2120_p6 }
 0x682   : > { %p1921_p1 = pneg %p1920_p0 }
 0x684   : > { %2033 = dma.done.wait (%p1921_p1), %s1499_s12, 16  }
 0x685   : > { %2035 = vsyncadd (%p1921_p1), %s1499_s12, 4294967280  ;;  %p14_p2 = scmp.ge.s32.totalorder %s2104_s21, 10   ;;  %s2559_s15 = smov %s2042_s16 }
 0x686   : > { %s2560_s16 = smov %s2046_s17  ;;  %s2561_s17 = smov %s2114_s24 }
 0x687   : > { %s2562_s18 = smov %s2104_s21  ;;  %16 = sbr.rel (!%p14_p2) target bundleno = 3 (0x3), region = 83 }
 0x68c   :  { %1503 = vsyncpa [#allocation3], 1 }
 0x68d   :  { %1505 = vsyncpa [#allocation3 + $0x1], 1 }

</bundles_post_ra>
